<compile_context>
chip_gen: v5e
topology: v5e:2x2
jax: 0.10.0
libtpu: 0.0.40
codegen_flags: <defaults>
</compile_context>

<pallas_src>
import jax
import jax.numpy as jnp
from jax.experimental import pallas as pl
from jax.experimental.pallas import tpu as pltpu


def _round_up(x: int, m: int) -> int:
    return (x + m - 1) // m * m


def _pick_tile(padded_dim: int, candidates=(512, 256, 128)) -> int:
    for c in candidates:
        if padded_dim % c == 0:
            return c
    return 128


def _ffn_kernel(x_ref, wt_ref, b_ref, o_ref, acc_ref):
    # x_ref:  (tm, tk) f32     wt_ref: (tk, tn) bf16
    # b_ref:  (1,  tn) f32     o_ref:  (tm, tn) f32
    # acc_ref:(tm, tn) f32 VMEM scratch, persistent across the K grid axis.
    k = pl.program_id(2)

    @pl.when(k == 0)
    def _init():
        acc_ref[...] = jnp.zeros_like(acc_ref)

    x = x_ref[...].astype(jnp.bfloat16)          # bf16 MXU feed, f32 accumulate
    acc_ref[...] += jnp.dot(x, wt_ref[...], preferred_element_type=jnp.float32)

    @pl.when(k == pl.num_programs(2) - 1)
    def _finalize():
        y = acc_ref[...] + b_ref[...]            # bias + ReLU once, at k==last
        o_ref[...] = jnp.maximum(y, 0.0).astype(o_ref.dtype)


def prepare_params(w: jax.Array, b: jax.Array):
    """One-time, parameter-load-time prep (NOT in the per-call hot path).

    w: (out_features, in_features) float32  -- PyTorch nn.Linear layout
    b: (out_features,) float32
    Returns (wt, b2): wt is (in_p, out_p) bf16, b2 is (1, out_p) f32, both
    zero-padded so the tiled dims are lane-dense multiples of 128.
    """
    n, k = w.shape
    kp, np_ = _round_up(k, 128), _round_up(n, 128)
    wt = jnp.zeros((kp, np_), jnp.bfloat16).at[:k, :n].set(w.T.astype(jnp.bfloat16))
    b2 = jnp.zeros((1, np_), jnp.float32).at[:, :n].set(b.astype(jnp.float32))
    return wt, b2


def feed_forward(x: jax.Array, wt: jax.Array, b2: jax.Array,
                 *, out_dim: int) -> jax.Array:
    """relu(x @ w.T + b) with w pre-transposed/padded by prepare_params.

    x:  (batch, in_features) float32
    wt: (in_p, out_p) bfloat16   (padded, pre-transposed weight)
    b2: (1, out_p) float32       (padded bias)
    returns (batch, out_dim) float32
    """
    m, kdim = x.shape
    kp, np_ = wt.shape
    assert b2.shape == (1, np_)
    assert kdim <= kp and out_dim <= np_

    # Tile sizes: lane-dense (multiples of 128) on N/K, sublane-aligned on M.
    tn = _pick_tile(np_)
    tk = _pick_tile(kp)
    m8 = _round_up(m, 8)
    tm = m8 if m8 <= 256 else 256
    mp = _round_up(m, tm)

    # Pad activations so every tile is full (cheap: x is tiny vs the weight
    # stream; a no-op for already-aligned shapes).
    if (mp, kp) != (m, kdim):
        x_p = jnp.zeros((mp, kp), x.dtype).at[:m, :kdim].set(x)
    else:
        x_p = x

    grid = (mp // tm, np_ // tn, kp // tk)
    flops = 2 * mp * np_ * kp
    bytes_accessed = x_p.size * 4 + wt.size * 2 + b2.size * 4 + mp * np_ * 4

    out = pl.pallas_call(
        _ffn_kernel,
        out_shape=jax.ShapeDtypeStruct((mp, np_), jnp.float32),
        grid_spec=pltpu.PrefetchScalarGridSpec(
            num_scalar_prefetch=0,
            grid=grid,
            in_specs=[
                pl.BlockSpec((tm, tk), lambda i, j, k: (i, k)),   # x tile
                pl.BlockSpec((tk, tn), lambda i, j, k: (k, j)),   # Wt tile
                pl.BlockSpec((1, tn), lambda i, j, k: (0, j)),    # bias tile
            ],
            out_specs=pl.BlockSpec((tm, tn), lambda i, j, k: (i, j)),
            scratch_shapes=[pltpu.VMEM((tm, tn), jnp.float32)],
        ),
        compiler_params=pltpu.CompilerParams(
            dimension_semantics=("parallel", "parallel", "arbitrary"),
        ),
        cost_estimate=pl.CostEstimate(
            flops=flops, transcendentals=0, bytes_accessed=bytes_accessed),
    )(x_p, wt, b2)

    return out[:m, :out_dim]


def init_params(key: jax.Array, hidden_dim: int):
    # PyTorch default nn.Linear init: U(-1/sqrt(in), 1/sqrt(in)).
    kw, kb = jax.random.split(key)
    bound = 1.0 / jnp.sqrt(jnp.float32(hidden_dim))
    w = jax.random.uniform(kw, (hidden_dim, hidden_dim), jnp.float32,
                           minval=-bound, maxval=bound)
    b = jax.random.uniform(kb, (hidden_dim,), jnp.float32,
                           minval=-bound, maxval=bound)
    return w, b


if __name__ == "__main__":
    hidden_dim = 32
    batch = 8

    key = jax.random.PRNGKey(0)
    kx, kparam = jax.random.split(key)
    x = jax.random.normal(kx, (batch, hidden_dim), jnp.float32)
    w, b = init_params(kparam, hidden_dim)

    # Parameter-load-time prep (transpose + bf16 cast + pad), outside hot path.
    wt, b2 = prepare_params(w, b)

    out = feed_forward(x, wt, b2, out_dim=hidden_dim)
    out = jax.block_until_ready(out)

    # Reference: same math as the PyTorch module, relu(x @ w.T + b), in f32.
    ref = jnp.maximum(x @ w.T + b, 0.0)
    assert out.shape == (batch, hidden_dim)
    # bf16 weight/activation feed with f32 accumulation -> small tolerance.
    assert jnp.allclose(out, ref, atol=3e-2, rtol=3e-2), float(
        jnp.max(jnp.abs(out - ref)))

    print("KERNEL_OK")
</pallas_src>

<mosaic_0001>
module attributes {stable_mosaic.version = 11 : i64} {
  func.func @_ffn_kernel(%arg0: i32, %arg1: i32, %arg2: i32, %arg3: memref<8x128xf32, #tpu.memory_space<vmem>>, %arg4: memref<128x128xbf16, #tpu.memory_space<vmem>>, %arg5: memref<1x128xf32, #tpu.memory_space<vmem>>, %arg6: memref<8x128xf32, #tpu.memory_space<vmem>>, %arg7: memref<8x128xf32, #tpu.memory_space<vmem>>) attributes {dimension_semantics = [#tpu.dimension_semantics<parallel>, #tpu.dimension_semantics<parallel>, #tpu.dimension_semantics<arbitrary>], iteration_bounds = array<i64: 1, 1, 1>, scalar_prefetch = 0 : i64, scratch_operands = 1 : i64, tpu.core_type = #tpu.core_type<tc>, window_params = [{transform_indices = @transform_0, window_bounds = array<i64: 8, 128>}, {transform_indices = @transform_1, window_bounds = array<i64: 128, 128>}, {transform_indices = @transform_2, window_bounds = array<i64: 1, 128>}, {transform_indices = @transform_3, window_bounds = array<i64: 8, 128>}]} {
    %c0_i32 = arith.constant 0 : i32
    %0 = arith.cmpi eq, %arg2, %c0_i32 : i32
    %1 = arith.extui %0 : i1 to i32
    %c0_i32_0 = arith.constant 0 : i32
    %2 = arith.cmpi ne, %1, %c0_i32_0 : i32
    scf.if %2 {
      %cst_10 = arith.constant 0.000000e+00 : f32
      %13 = vector.broadcast %cst_10 : f32 to vector<8x128xf32>
      %c0_11 = arith.constant 0 : index
      %c0_12 = arith.constant 0 : index
      %14 = vector.load %arg7[%c0_11, %c0_12] : memref<8x128xf32, #tpu.memory_space<vmem>>, vector<8x128xf32>
      tpu.vector_store %arg7[%c0_11, %c0_12], %13 {strides = array<i32>} : memref<8x128xf32, #tpu.memory_space<vmem>>, vector<8x128xf32>,
    } else {
    }
    %c0 = arith.constant 0 : index
    %c0_1 = arith.constant 0 : index
    %3 = vector.load %arg3[%c0, %c0_1] : memref<8x128xf32, #tpu.memory_space<vmem>>, vector<8x128xf32>
    %4 = arith.truncf %3 : vector<8x128xf32> to vector<8x128xbf16>
    %c0_2 = arith.constant 0 : index
    %c0_3 = arith.constant 0 : index
    %5 = vector.load %arg7[%c0_2, %c0_3] : memref<8x128xf32, #tpu.memory_space<vmem>>, vector<8x128xf32>
    %c0_4 = arith.constant 0 : index
    %c0_5 = arith.constant 0 : index
    %6 = vector.load %arg4[%c0_4, %c0_5] : memref<128x128xbf16, #tpu.memory_space<vmem>>, vector<128x128xbf16>
    %cst = arith.constant dense<0.000000e+00> : vector<8x128xf32>
    %7 = tpu.matmul %4, %6, %cst {dimension_numbers = #tpu.dot_dimension_numbers<[1], [0], [0], [1], [0, 0, 1, 1], [], []>} : vector<8x128xbf16>, vector<128x128xbf16>, vector<8x128xf32> -> vector<8x128xf32>
    %8 = arith.addf %5, %7 : vector<8x128xf32>
    %c0_6 = arith.constant 0 : index
    %c0_7 = arith.constant 0 : index
    %9 = vector.load %arg7[%c0_6, %c0_7] : memref<8x128xf32, #tpu.memory_space<vmem>>, vector<8x128xf32>
    tpu.vector_store %arg7[%c0_6, %c0_7], %8 {strides = array<i32>} : memref<8x128xf32, #tpu.memory_space<vmem>>, vector<8x128xf32>,
    %c0_i32_8 = arith.constant 0 : i32
    %10 = arith.cmpi eq, %arg2, %c0_i32_8 : i32
    %11 = arith.extui %10 : i1 to i32
    %c0_i32_9 = arith.constant 0 : i32
    %12 = arith.cmpi ne, %11, %c0_i32_9 : i32
    scf.if %12 {
      %c0_10 = arith.constant 0 : index
      %c0_11 = arith.constant 0 : index
      %13 = vector.load %arg7[%c0_10, %c0_11] : memref<8x128xf32, #tpu.memory_space<vmem>>, vector<8x128xf32>
      %c0_12 = arith.constant 0 : index
      %c0_13 = arith.constant 0 : index
      %14 = vector.load %arg5[%c0_12, %c0_13] : memref<1x128xf32, #tpu.memory_space<vmem>>, vector<1x128xf32>
      %15 = vector.broadcast %14 : vector<1x128xf32> to vector<8x128xf32>
      %16 = arith.addf %13, %15 : vector<8x128xf32>
      %cst_14 = arith.constant 0.000000e+00 : f32
      %17 = vector.broadcast %cst_14 : f32 to vector<8x128xf32>
      %18 = arith.maximumf %16, %17 : vector<8x128xf32>
      %c0_15 = arith.constant 0 : index
      %c0_16 = arith.constant 0 : index
      %19 = vector.load %arg6[%c0_15, %c0_16] : memref<8x128xf32, #tpu.memory_space<vmem>>, vector<8x128xf32>
      tpu.vector_store %arg6[%c0_15, %c0_16], %18 {strides = array<i32>} : memref<8x128xf32, #tpu.memory_space<vmem>>, vector<8x128xf32>,
    } else {
    }
    return
  }
  func.func @transform_0(%arg0: i32, %arg1: i32, %arg2: i32) -> (i32, i32) {
    %c0_i32 = arith.constant 0 : i32
    return %arg0, %arg2 : i32, i32
  }
  func.func @transform_1(%arg0: i32, %arg1: i32, %arg2: i32) -> (i32, i32) {
    %c0_i32 = arith.constant 0 : i32
    return %arg2, %arg1 : i32, i32
  }
  func.func @transform_2(%arg0: i32, %arg1: i32, %arg2: i32) -> (i32, i32) {
    %c0_i32 = arith.constant 0 : i32
    %c0_i32_0 = arith.constant 0 : i32
    return %c0_i32, %arg1 : i32, i32
  }
  func.func @transform_3(%arg0: i32, %arg1: i32, %arg2: i32) -> (i32, i32) {
    %c0_i32 = arith.constant 0 : i32
    return %arg0, %arg1 : i32, i32
  }
}

</mosaic_0001>

<bundles_post_ra>
// kernel: tpu_custom_call.1
= control target key start
LH: loop header
LB: loop body
LE: loop exit
PB: predicated region body
PF: predicated region fallthrough
CT: control target
= control target key end

     0   :  { %8 = vsyncpa [#allocation4], 0  ;;  %s322_s0 = inlined_call_operand.hbm [shape: f32[8,128], index: 0, kind: input, shape index: {}]   ;;  %s323_s1 = inlined_call_operand.hbm [shape: bf16[128,128], index: 1, kind: input, shape index: {}]   ;;  %s324_s2 = inlined_call_operand.vmem [shape: f32[1,128], index: 2, kind: input, shape index: {}]   ;;  %s325_s3 = inlined_call_operand.hbm [shape: f32[8,128], index: 3, kind: output, shape index: {}]  }
   0x1   :  { %9 = vsyncpa [#allocation7], 0 }
   0x2   :  { %10 = vsyncpa [#allocation5], 0  ;;  %s16_s14 = sshll.u32 %s322_s0, 4  ;;  %s285_s15 = smov [#allocation3]   ;;  %s17_s14 = int_to_ptr.hbm [resolvable:$true] %s16_s14 }
   0x3   :  { %s18_s16 = sshll.u32 %s285_s15, 4  ;;  %s26_s19 = sshll.u32 %s323_s1, 4  ;;  %s19_s16 = int_to_ptr.vmem [resolvable:$true] %s18_s16  ;;  %s27_s19 = int_to_ptr.hbm [resolvable:$true] %s26_s19 }
   0x4   :  { %21 = dma.hbm_to_vmem [thread:$0]  %s17_s14, 128, %s19_s16, [#allocation4]  }
   0x5   :  { %s286_s20 = smov [#allocation6]   ;;  %s287_s22 = smov 64  }
   0x6   :  { %s28_s21 = sshll.u32 %s286_s20, 4  ;;  %s288_s23 = smov 4   ;;  %s29_s21 = int_to_ptr.vmem [resolvable:$true] %s28_s21 }
   0x7   :  { %34 = dma.hbm_to_vmem [thread:$0]  %s27_s19, 1024, %s29_s21, [#allocation7], %s287_s22, %s287_s22, %s288_s23  }
   0x8   :  { %279 = dma.done.wait [#allocation4], 128  }
   0x9   :  { %280 = vsyncadd [#allocation4], 4294967168 }
   0xa   :  { %281 = dma.done.wait [#allocation7], 1024  }
   0xb   :  { %282 = vsyncadd [#allocation7], 4294966272  ;;  %v200_v0 = vld [vmem:[#allocation6 + $0x38] sm:$0xff]  ;;  %v199_v1 = vld [vmem:[#allocation6 + $0x30] sm:$0xff]  ;;  %s289_s24 = smov [#allocation8]   ;;  %s150_s28 = sshll.u32 %s325_s3, 4  ;;  %s151_s28 = int_to_ptr.hbm [resolvable:$true] %s150_s28 }
   0xc   :  { %117 = vmatpush.bf16.msra.mxu0 %v200_v0  ;;  %v198_v2 = vld [vmem:[#allocation6 + $0x28] sm:$0xff]  ;;  %v197_v3 = vld [vmem:[#allocation6 + $0x20] sm:$0xff]  ;;  %v196_v4 = vld [vmem:[#allocation6 + $0x18] sm:$0xff]  ;;  %s148_s25 = sshll.u32 %s289_s24, 4  ;;  %s149_s25 = int_to_ptr.vmem [resolvable:$true] %s148_s25 }
   0xd   :  { %v195_v5 = vld [vmem:[#allocation6 + $0x10] sm:$0xff]  ;;  %v194_v6 = vld [vmem:[#allocation6 + $0x8] sm:$0xff]  ;;  %v193_v7 = vld [vmem:[#allocation6] sm:$0xff] }
   0xe   :  { %v50_v8 = vld [vmem:[#allocation3] sm:$0xff] }
   0xf   :  { %v51_v9 = vpack.c.bf16 %v50_v8, %v50_v8  ;;  %v206_v10 = vld [vmem:[%s324_s2] ss:$0 sm:$0xff] }
  0x10   :  { %118 = vmatpush.bf16.msra.mxu0 %v199_v1 }
  0x14   :  { %119 = vmatpush.bf16.msra.mxu0 %v198_v2 }
  0x18   :  { %120 = vmatpush.bf16.msra.mxu0 %v197_v3 }
  0x1c   :  { %121 = vmatpush.bf16.msra.mxu0 %v196_v4 }
  0x20   :  { %122 = vmatpush.bf16.msra.mxu0 %v195_v5 }
  0x24   :  { %123 = vmatpush.bf16.msra.mxu0 %v194_v6 }
  0x28   :  { %124 = vmatpush.bf16.msra.mxu0 %v193_v7 }
  0x2b   :  { %125 = vmatmul.bf16.vlgmr.msra.gmra.mxu0 %v51_v9 }
  0xa8   :  { %v126_v11 = vpop.f32.mrf.mxu0 }
  0xa9   :  { %v140_v12 = vadd.f32 %v206_v10, %v126_v11 }
  0xab   :  { %v141_v13 = vmax.f32 %v140_v12, 0.0 }
  0xad   :  { %142 = vst [vmem:[#allocation8] sm:$0xff] %v141_v13 }
  0xae   :  { %153 = dma.vmem_to_hbm [thread:$0]  %s149_s25, 128, %s151_s28, [#allocation5]  }
  0xb0   :  { %v128_v14 = vpop.f32.mrf.mxu0 }
  0xb1   :  { %283 = dma.done.wait [#allocation5], 128  }
  0xb2   :  { %284 = vsyncadd [#allocation5], 4294967168 }
  0xb3   :  { %158 = vsyncpa [#allocation4], 1 }
  0xb4   :  { %159 = vsyncpa [#allocation7], 1 }
  0xb5   :  { %160 = vsyncpa [#allocation5], 1 }

</bundles_post_ra>
